<compile_context>
chip_gen: v5e
topology: v5e:2x2
jax: 0.10.0
libtpu: 0.0.40
codegen_flags: <defaults>
</compile_context>

<pallas_src>
import functools

import jax
import jax.numpy as jnp
from jax.experimental import pallas as pl
from jax.experimental.pallas import tpu as pltpu


def _round_up(v, m):
    return (v + m - 1) // m * m


def _cdiv(a, b):
    return (a + b - 1) // b


def pinn_mlp_kernel(x_ref, w1_ref, b1_ref, w2_ref, b2_ref, w3_ref, b3_ref, o_ref,
                    *, hidden_dtype):
    # x_ref:  (1, NT)        lane-dense batch tile
    # w1_ref: (Hp, 1)  b1_ref: (Hp, 1)
    # w2_ref: (Hp, Hp) b2_ref: (Hp, 1)
    # w3_ref: (1, Hp)  b3_ref: (1, 1)
    # o_ref:  (1, NT)        lane-dense output tile
    x_row = x_ref[...]                                            # (1, NT)

    # Layer 1: degenerate K=1 matmul done as a VPU broadcast multiply-add.
    h1 = jnp.tanh(w1_ref[...] * x_row + b1_ref[...])              # (Hp, NT) f32
    h1 = h1.astype(hidden_dtype)

    # Layer 2: dense (Hp,Hp)@(Hp,NT) on the MXU, f32 accumulation, full-precision
    # passes (MXU is nowhere near the bottleneck, so HIGHEST is free).
    z2 = jnp.dot(w2_ref[...].astype(hidden_dtype), h1,
                 preferred_element_type=jnp.float32,
                 precision=jax.lax.Precision.HIGHEST)
    h2 = jnp.tanh(z2 + b2_ref[...]).astype(hidden_dtype)          # (Hp, NT)

    # Layer 3: (1,Hp)@(Hp,NT) -> lane-dense (1, NT).
    out = jnp.dot(w3_ref[...].astype(hidden_dtype), h2,
                  preferred_element_type=jnp.float32,
                  precision=jax.lax.Precision.HIGHEST) + b3_ref[...]
    o_ref[...] = out.astype(o_ref.dtype)                          # (1, NT)


def prepare_params(w1, b1, w2, b2, w3, b3):
    """One-time padding of the weights to TPU-friendly shapes (hoisted out of the
    per-call path). Weights/biases come in PyTorch layout:
       w1 (H,1) b1 (H,), w2 (H,H) b2 (H,), w3 (1,H) b3 (1,)."""
    h = w2.shape[0]
    h_pad = _round_up(h, 8)                    # sublane multiple only (50 -> 56)
    f32 = jnp.float32
    # Zero padding keeps the math exact (padded hidden units contribute 0 downstream).
    w1p = jnp.zeros((h_pad, 1), f32).at[:h].set(w1.astype(f32))
    b1p = jnp.zeros((h_pad, 1), f32).at[:h].set(b1.reshape(h, 1).astype(f32))
    w2p = jnp.zeros((h_pad, h_pad), f32).at[:h, :h].set(w2.astype(f32))
    b2p = jnp.zeros((h_pad, 1), f32).at[:h].set(b2.reshape(h, 1).astype(f32))
    w3p = jnp.zeros((1, h_pad), f32).at[:, :h].set(w3.astype(f32))
    b3p = b3.reshape(1, 1).astype(f32)
    return (w1p, b1p, w2p, b2p, w3p, b3p)


def _select_tile(n, n_tile_max=8192):
    """Pick (n_tile, n_pad). Keep grid >= 2 when possible (v7x: 2 TensorCores),
    cap the tile at n_tile_max to amortize per-step overhead for large N."""
    n_pad = _round_up(n, 128)
    if n_pad <= 128:
        return 128, 128
    n_tile = min(_round_up(_cdiv(n_pad, 2), 128), n_tile_max)
    n_pad = _round_up(n, n_tile)
    return n_tile, n_pad


def pinn_forward(x, prepared_params, *, n_tile_max=8192, hidden_dtype=jnp.float32):
    """x: (N, 1) f32; prepared_params from prepare_params(). Returns (N, 1)."""
    n = x.shape[0]
    w1p, b1p, w2p, b2p, w3p, b3p = prepared_params
    n_tile, n_pad = _select_tile(n, n_tile_max)

    f32 = jnp.float32
    # Lane-dense input: batch on the lane axis; only the x lane-pad is per-call.
    x_t = jnp.zeros((1, n_pad), f32).at[:, :n].set(x.reshape(1, n).astype(f32))

    grid = (n_pad // n_tile,)

    def resident(a):  # weights: same block every grid step -> stays VMEM-resident
        nd = a.ndim
        return pl.BlockSpec(a.shape, lambda i: (0,) * nd)

    kernel = functools.partial(pinn_mlp_kernel, hidden_dtype=hidden_dtype)

    out_t = pl.pallas_call(
        kernel,
        out_shape=jax.ShapeDtypeStruct((1, n_pad), f32),
        grid=grid,
        in_specs=[
            pl.BlockSpec((1, n_tile), lambda i: (0, i)),   # x tile (lane-dense)
            resident(w1p), resident(b1p),
            resident(w2p), resident(b2p),
            resident(w3p), resident(b3p),
        ],
        out_specs=pl.BlockSpec((1, n_tile), lambda i: (0, i)),  # lane-dense output
        compiler_params=pltpu.CompilerParams(
            dimension_semantics=("parallel",),             # megacore sharding on v7x
        ),
    )(x_t, w1p, b1p, w2p, b2p, w3p, b3p)

    return out_t[:, :n].reshape(n, 1)


def init_params(key, hidden_size=50):
    # PyTorch nn.Linear default init: U(-1/sqrt(fan_in), 1/sqrt(fan_in)),
    # weights stored in PyTorch (out_features, in_features) layout.
    ks = jax.random.split(key, 6)

    def linear(kw, kb, fan_in, fan_out):
        bound = 1.0 / jnp.sqrt(jnp.float32(fan_in))
        w = jax.random.uniform(kw, (fan_out, fan_in), jnp.float32, -bound, bound)
        b = jax.random.uniform(kb, (fan_out,), jnp.float32, -bound, bound)
        return w, b

    w1, b1 = linear(ks[0], ks[1], 1, hidden_size)
    w2, b2 = linear(ks[2], ks[3], hidden_size, hidden_size)
    w3, b3 = linear(ks[4], ks[5], hidden_size, 1)
    return w1, b1, w2, b2, w3, b3


def _jax_reference(x, params):
    w1, b1, w2, b2, w3, b3 = params
    h = jnp.tanh(x @ w1.T + b1)
    h = jnp.tanh(h @ w2.T + b2)
    return h @ w3.T + b3


if __name__ == "__main__":
    key = jax.random.PRNGKey(0)

    hidden_size = 50
    params = init_params(key, hidden_size)
    prepared = prepare_params(*params)   # one-time, hoisted out of the call path

    # Reference size: x = np.linspace(0, 10, 100) in the original script.
    n = 100
    x = jnp.linspace(0.0, 10.0, n, dtype=jnp.float32).reshape(n, 1)
    out = jax.block_until_ready(pinn_forward(x, prepared))
    ref = _jax_reference(x, params)
    assert out.shape == (n, 1)
    assert jnp.allclose(out, ref, atol=1e-4, rtol=1e-4), float(jnp.max(jnp.abs(out - ref)))

    # Larger batch: exercises the multi-tile (grid >= 2, "parallel") path.
    n2 = 1000
    x2 = jnp.linspace(0.0, 10.0, n2, dtype=jnp.float32).reshape(n2, 1)
    out2 = jax.block_until_ready(pinn_forward(x2, prepared))
    ref2 = _jax_reference(x2, params)
    assert out2.shape == (n2, 1)
    assert jnp.allclose(out2, ref2, atol=1e-4, rtol=1e-4), float(jnp.max(jnp.abs(out2 - ref2)))

    # TODO(synk): optional bf16 hidden path (hidden_dtype=jnp.bfloat16) for v6e/v7x
    # EUP throughput — only after validating PINN derivative accuracy; v5e stays f32.

    print("KERNEL_OK")
</pallas_src>

<mosaic_0001>
module attributes {stable_mosaic.version = 11 : i64} {
  func.func @pinn_mlp_kernel(%arg0: i32, %arg1: memref<1x128xf32, #tpu.memory_space<vmem>>, %arg2: memref<56x1xf32, #tpu.memory_space<vmem>>, %arg3: memref<56x1xf32, #tpu.memory_space<vmem>>, %arg4: memref<56x56xf32, #tpu.memory_space<vmem>>, %arg5: memref<56x1xf32, #tpu.memory_space<vmem>>, %arg6: memref<1x56xf32, #tpu.memory_space<vmem>>, %arg7: memref<1x1xf32, #tpu.memory_space<vmem>>, %arg8: memref<1x128xf32, #tpu.memory_space<vmem>>) attributes {dimension_semantics = [#tpu.dimension_semantics<parallel>], iteration_bounds = array<i64: 1>, scalar_prefetch = 0 : i64, scratch_operands = 0 : i64, tpu.core_type = #tpu.core_type<tc>, window_params = [{transform_indices = @transform_0, window_bounds = array<i64: 1, 128>}, {pipeline_mode = #tpu.pipeline_mode<synchronous>, transform_indices = @transform_1, window_bounds = array<i64: 56, 1>}, {pipeline_mode = #tpu.pipeline_mode<synchronous>, transform_indices = @transform_2, window_bounds = array<i64: 56, 1>}, {pipeline_mode = #tpu.pipeline_mode<synchronous>, transform_indices = @transform_3, window_bounds = array<i64: 56, 56>}, {pipeline_mode = #tpu.pipeline_mode<synchronous>, transform_indices = @transform_4, window_bounds = array<i64: 56, 1>}, {pipeline_mode = #tpu.pipeline_mode<synchronous>, transform_indices = @transform_5, window_bounds = array<i64: 1, 56>}, {pipeline_mode = #tpu.pipeline_mode<synchronous>, transform_indices = @transform_6, window_bounds = array<i64: 1, 1>}, {transform_indices = @transform_7, window_bounds = array<i64: 1, 128>}]} {
    %c0 = arith.constant 0 : index
    %c0_0 = arith.constant 0 : index
    %0 = vector.load %arg1[%c0, %c0_0] : memref<1x128xf32, #tpu.memory_space<vmem>>, vector<1x128xf32>
    %c0_1 = arith.constant 0 : index
    %c0_2 = arith.constant 0 : index
    %1 = vector.load %arg2[%c0_1, %c0_2] : memref<56x1xf32, #tpu.memory_space<vmem>>, vector<56x1xf32>
    %2 = vector.broadcast %1 : vector<56x1xf32> to vector<56x128xf32>
    %3 = vector.broadcast %0 : vector<1x128xf32> to vector<56x128xf32>
    %4 = arith.mulf %2, %3 : vector<56x128xf32>
    %c0_3 = arith.constant 0 : index
    %c0_4 = arith.constant 0 : index
    %5 = vector.load %arg3[%c0_3, %c0_4] : memref<56x1xf32, #tpu.memory_space<vmem>>, vector<56x1xf32>
    %6 = vector.broadcast %5 : vector<56x1xf32> to vector<56x128xf32>
    %7 = arith.addf %4, %6 : vector<56x128xf32>
    %8 = math.tanh %7 : vector<56x128xf32>
    %c0_5 = arith.constant 0 : index
    %c0_6 = arith.constant 0 : index
    %9 = vector.load %arg4[%c0_5, %c0_6] : memref<56x56xf32, #tpu.memory_space<vmem>>, vector<56x56xf32>
    %cst = arith.constant dense<0.000000e+00> : vector<56x128xf32>
    %10 = tpu.matmul %9, %8, %cst {dimension_numbers = #tpu.dot_dimension_numbers<[1], [0], [0], [1], [0, 0, 1, 1], [], []>, precision = #tpu.contract_precision<fp32>} : vector<56x56xf32>, vector<56x128xf32>, vector<56x128xf32> -> vector<56x128xf32>
    %c0_7 = arith.constant 0 : index
    %c0_8 = arith.constant 0 : index
    %11 = vector.load %arg5[%c0_7, %c0_8] : memref<56x1xf32, #tpu.memory_space<vmem>>, vector<56x1xf32>
    %12 = vector.broadcast %11 : vector<56x1xf32> to vector<56x128xf32>
    %13 = arith.addf %10, %12 : vector<56x128xf32>
    %14 = math.tanh %13 : vector<56x128xf32>
    %c0_9 = arith.constant 0 : index
    %c0_10 = arith.constant 0 : index
    %15 = vector.load %arg6[%c0_9, %c0_10] : memref<1x56xf32, #tpu.memory_space<vmem>>, vector<1x56xf32>
    %cst_11 = arith.constant dense<0.000000e+00> : vector<1x128xf32>
    %16 = tpu.matmul %15, %14, %cst_11 {dimension_numbers = #tpu.dot_dimension_numbers<[1], [0], [0], [1], [0, 0, 1, 1], [], []>, precision = #tpu.contract_precision<fp32>} : vector<1x56xf32>, vector<56x128xf32>, vector<1x128xf32> -> vector<1x128xf32>
    %c0_12 = arith.constant 0 : index
    %c0_13 = arith.constant 0 : index
    %17 = vector.load %arg7[%c0_12, %c0_13] : memref<1x1xf32, #tpu.memory_space<vmem>>, vector<1x1xf32>
    %18 = vector.broadcast %17 : vector<1x1xf32> to vector<1x128xf32>
    %19 = arith.addf %16, %18 : vector<1x128xf32>
    %c0_14 = arith.constant 0 : index
    %c0_15 = arith.constant 0 : index
    %20 = vector.load %arg8[%c0_14, %c0_15] : memref<1x128xf32, #tpu.memory_space<vmem>>, vector<1x128xf32>
    tpu.vector_store %arg8[%c0_14, %c0_15], %19 {strides = array<i32>} : memref<1x128xf32, #tpu.memory_space<vmem>>, vector<1x128xf32>,
    return
  }
  func.func @transform_0(%arg0: i32) -> (i32, i32) {
    %c0_i32 = arith.constant 0 : i32
    %c0_i32_0 = arith.constant 0 : i32
    return %c0_i32, %arg0 : i32, i32
  }
  func.func @transform_1(%arg0: i32) -> (i32, i32) {
    %c0_i32 = arith.constant 0 : i32
    %c0_i32_0 = arith.constant 0 : i32
    %c0_i32_1 = arith.constant 0 : i32
    return %c0_i32, %c0_i32_0 : i32, i32
  }
  func.func @transform_2(%arg0: i32) -> (i32, i32) {
    %c0_i32 = arith.constant 0 : i32
    %c0_i32_0 = arith.constant 0 : i32
    %c0_i32_1 = arith.constant 0 : i32
    return %c0_i32, %c0_i32_0 : i32, i32
  }
  func.func @transform_3(%arg0: i32) -> (i32, i32) {
    %c0_i32 = arith.constant 0 : i32
    %c0_i32_0 = arith.constant 0 : i32
    %c0_i32_1 = arith.constant 0 : i32
    return %c0_i32, %c0_i32_0 : i32, i32
  }
  func.func @transform_4(%arg0: i32) -> (i32, i32) {
    %c0_i32 = arith.constant 0 : i32
    %c0_i32_0 = arith.constant 0 : i32
    %c0_i32_1 = arith.constant 0 : i32
    return %c0_i32, %c0_i32_0 : i32, i32
  }
  func.func @transform_5(%arg0: i32) -> (i32, i32) {
    %c0_i32 = arith.constant 0 : i32
    %c0_i32_0 = arith.constant 0 : i32
    %c0_i32_1 = arith.constant 0 : i32
    return %c0_i32, %c0_i32_0 : i32, i32
  }
  func.func @transform_6(%arg0: i32) -> (i32, i32) {
    %c0_i32 = arith.constant 0 : i32
    %c0_i32_0 = arith.constant 0 : i32
    %c0_i32_1 = arith.constant 0 : i32
    return %c0_i32, %c0_i32_0 : i32, i32
  }
  func.func @transform_7(%arg0: i32) -> (i32, i32) {
    %c0_i32 = arith.constant 0 : i32
    %c0_i32_0 = arith.constant 0 : i32
    return %c0_i32, %arg0 : i32, i32
  }
}

</mosaic_0001>

<bundles_post_ra>
// kernel: tpu_custom_call.1
= control target key start
LH: loop header
LB: loop body
LE: loop exit
PB: predicated region body
PF: predicated region fallthrough
CT: control target
= control target key end

     0   :  { %s1252_s0 = inlined_call_operand.vmem [shape: f32[1,128], index: 0, kind: input, shape index: {}]   ;;  %s1253_s1 = inlined_call_operand.vmem [shape: f32[56,1], index: 1, kind: input, shape index: {}]   ;;  %s1254_s2 = inlined_call_operand.vmem [shape: f32[56,1], index: 2, kind: input, shape index: {}]   ;;  %s1255_s3 = inlined_call_operand.vmem [shape: f32[56,56], index: 3, kind: input, shape index: {}]   ;;  %s1256_s4 = inlined_call_operand.vmem [shape: f32[56,1], index: 4, kind: input, shape index: {}]   ;;  %s1257_s5 = inlined_call_operand.vmem [shape: f32[1,56], index: 5, kind: input, shape index: {}]   ;;  %s1258_s6 = inlined_call_operand.<no memory space> [shape: f32[1,1], index: 6, kind: input, shape index: {}]   ;;  %s1259_s7 = inlined_call_operand.hbm [shape: f32[1,128], index: 7, kind: output, shape index: {}]  }
   0x1   :  { %v12_v0 = vstv %s1258_s6 }
   0x2   :  { %13 = vst [vmem:[#allocation2] sm:$0x1] %v12_v0 }
   0x3   :  { %v87_v1 = vld [vmem:[%s1254_s2 + $0x28] sm:$0xff]  ;;  %v88_v2 = vld [vmem:[%s1254_s2 + $0x30] sm:$0xff]  ;;  %v938_v4 = vmov 0  }
   0x4   :  { %v36_v3 = vld [vmem:[%s1253_s1 + $0x30] sm:$0xff]  ;;  %882 = vset.pattern.permute.xlu2 %v938_v4  ;;  %881 = vset.pattern.permute.xlu1 %v938_v4 }
   0x5   :  { %880 = vset.pattern.permute.xlu0 %v938_v4  ;;  %116 = vperm.xlu2 %882, %v87_v1  }
   0x6   :  { %121 = vperm.xlu1 %881, %v88_v2   ;;  %69 = vperm.xlu0 %880, %v36_v3  }
   0x7   :  { %14 = vsyncpa [#allocation4], 0  ;;  %v33_v5 = vld [vmem:[%s1253_s1 + $0x18] sm:$0xff]  ;;  %v35_v6 = vld [vmem:[%s1253_s1 + $0x28] sm:$0xff]  ;;  %vm187_vm0 = vcmask 457728   ;;  %s869_s11 = sshll.u32 %s1259_s7, 4  ;;  %s870_s11 = int_to_ptr.hbm [resolvable:$true] %s869_s11 }
   0x8   :  { %v34_v7 = vld [vmem:[%s1253_s1 + $0x20] sm:$0xff]  ;;  %v85_v8 = vld [vmem:[%s1254_s2 + $0x18] sm:$0xff]  ;;  %v32_v10 = vld [vmem:[%s1253_s1 + $0x10] sm:$0xff] }
   0x9   :  { %v86_v9 = vld [vmem:[%s1254_s2 + $0x20] sm:$0xff]  ;;  %v84_v12 = vld [vmem:[%s1254_s2 + $0x10] sm:$0xff]  ;;  %v31_v13 = vld [vmem:[%s1253_s1 + $0x8] sm:$0xff] }
   0xa   :  { %v30_v11 = vld [vmem:[%s1253_s1] sm:$0xff]  ;;  %v151_v14 = vld [vmem:[%s1256_s4 + $0x30] sm:$0xff]  ;;  %v83_v16 = vld [vmem:[%s1254_s2 + $0x8] sm:$0xff] }
   0xb   :  { %v82_v15 = vld [vmem:[%s1254_s2] sm:$0xff]  ;;  %v148_v17 = vld [vmem:[%s1256_s4 + $0x18] sm:$0xff]  ;;  %v150_v19 = vld [vmem:[%s1256_s4 + $0x28] sm:$0xff] }
   0xc   :  { %v149_v18 = vld [vmem:[%s1256_s4 + $0x20] sm:$0xff]  ;;  %v146_v21 = vld [vmem:[%s1256_s4 + $0x8] sm:$0xff]  ;;  %v147_v22 = vld [vmem:[%s1256_s4 + $0x10] sm:$0xff] }
   0xd   :  { %54 = vperm.xlu2 %882, %v33_v5   ;;  %v145_v20 = vld [vmem:[%s1256_s4] sm:$0xff] }
   0xe   :  { %64 = vperm.xlu0 %880, %v35_v6   ;;  %59 = vperm.xlu1 %881, %v34_v7   ;;  %v627_v23 = vld [vmem:[#allocation2] sm:$0x1]  ;;  %v139_v6 = vld [vmem:[%s1255_s3 + $0x8] sm:$0xff] }
   0xf   :  { %v1049_v26 = vld [vmem:[%s1252_s0] ss:$0 sm:$0xff] }
  0x10   :  { %v138_v53 = vld [vmem:[%s1255_s3] sm:$0xff] }
  0x11   :  { %v189_v61 = vsel %vm187_vm0, %v138_v53, 0 }
  0x12   :  { %v1097_v3 = vand.u32 4294901760, %v189_v61 }
  0x15   :  { %106 = vperm.xlu2 %882, %v85_v8  }
  0x16   :  { %111 = vperm.xlu0 %880, %v86_v9   ;;  %49 = vperm.xlu1 %881, %v32_v10  }
  0x1d   :  { %39 = vperm.xlu2 %882, %v30_v11  }
  0x1e   :  { %101 = vperm.xlu1 %881, %v84_v12   ;;  %44 = vperm.xlu0 %880, %v31_v13   ;;  %v233_v13 = vsub.f32 %v189_v61, %v1097_v3 }
  0x25   :  { %184 = vperm.xlu2 %882, %v151_v14  }
  0x26   :  { %91 = vperm.xlu1 %881, %v82_v15   ;;  %96 = vperm.xlu0 %880, %v83_v16  }
  0x2d   :  { %169 = vperm.xlu2 %882, %v148_v17   ;;  %v192_v17 = vsel %vm187_vm0, %v139_v6, 0 }
  0x2e   :  { %174 = vperm.xlu1 %881, %v149_v18   ;;  %179 = vperm.xlu0 %880, %v150_v19  }
  0x35   :  { %154 = vperm.xlu2 %882, %v145_v20  }
  0x36   :  { %159 = vperm.xlu1 %881, %v146_v21   ;;  %164 = vperm.xlu0 %880, %v147_v22   ;;  %v234_v22 = vand.u32 4294901760, %v233_v13 }
  0x3e   :  { %630 = vperm.xlu0 %880, %v627_v23   ;;  %v1121_v23 = vand.u32 4294901760, %v192_v17 }
  0x5f   :  { %v117_v24 = vpop.permute.xlu2 %116 }
  0x67   :  { %v55_v25 = vpop.permute.xlu2 %54 }
  0x68   :  { %v78_v30 = vmul.f32 %v1049_v26, %v55_v25  ;;  %v140_v25 = vld [vmem:[%s1255_s3 + $0x10] sm:$0xff] }
  0x6f   :  { %v107_v32 = vpop.permute.xlu2 %106 }
  0x70   :  { %v127_v33 = vadd.f32 %v107_v32, %v78_v30  ;;  %v195_v30 = vsel %vm187_vm0, %v140_v25, 0 }
  0x77   :  { %v40_v4 = vpop.permute.xlu2 %39 }
  0x78   :  { %v122_v27 = vpop.permute.xlu1 %121  ;;  %v70_v28 = vpop.permute.xlu0 %69  ;;  %v75_v7 = vmul.f32 %v1049_v26, %v40_v4 }
  0x79   :  { %v81_v29 = vmul.f32 %v1049_v26, %v70_v28  ;;  %v241_v28 = vsub.f32 %v192_v17, %v1121_v23 }
  0x7b   :  { %v130_v31 = vadd.f32 %v122_v27, %v81_v29  ;;  %v235_v27 = vsub.f32 %v233_v13, %v234_v22 }
  0x7d   :  { %884 = vtanh.f32 %v130_v31 }
  0x7e   :  { %886 = vtanh.f32 %v127_v33 }
  0x7f   :  { %v185_v17 = vpop.permute.xlu2 %184 }
  0x80   :  { %v65_v34 = vpop.permute.xlu0 %64  ;;  %v60_v35 = vpop.permute.xlu1 %59 }
  0x81   :  { %v80_v36 = vmul.f32 %v1049_v26, %v65_v34  ;;  %v79_v41 = vmul.f32 %v1049_v26, %v60_v35  ;;  %v236_v35 = vand.u32 4294901760, %v235_v27 }
  0x83   :  { %v885_v37 = vpop.eup %884  ;;  %v129_v38 = vadd.f32 %v117_v24, %v80_v36 }
  0x84   :  { %v1054_v39 = vand.u32 4294901760, %v885_v37  ;;  %v887_v42 = vpop.eup %886 }
  0x85   :  { %888 = vtanh.f32 %v129_v38  ;;  %v1067_v49 = vand.u32 4294901760, %v887_v42  ;;  %v1132_v38 = vand.u32 4294901760, %v195_v30 }
  0x86   :  { %219 = vmatpush.msra.mxu0 %v1054_v39  ;;  %445 = vmatpush.msra.mxu3 %v1054_v39  ;;  %v1059_v40 = vsub.f32 %v885_v37, %v1054_v39  ;;  %v242_v37 = vand.u32 4294901760, %v241_v28 }
  0x87   :  { %v1081_v55 = vsub.f32 %v887_v42, %v1067_v49 }
  0x88   :  { %v112_v43 = vpop.permute.xlu0 %111  ;;  %v50_v44 = vpop.permute.xlu1 %49  ;;  %380 = vmatpush.msra.mxu2 %v1059_v40  ;;  %v300_v45 = vand.u32 4294901760, %v1059_v40 }
  0x89   :  { %v128_v46 = vadd.f32 %v112_v43, %v79_v41  ;;  %v77_v54 = vmul.f32 %v1049_v26, %v50_v44  ;;  %v318_v0 = vand.u32 4294901760, %v1081_v55  ;;  %v141_v43 = vld [vmem:[%s1255_s3 + $0x18] sm:$0xff] }
  0x8a   :  { %v301_v47 = vsub.f32 %v1059_v40, %v300_v45  ;;  %v198_v53 = vsel %vm187_vm0, %v141_v43, 0 }
  0x8b   :  { %v889_v48 = vpop.eup %888  ;;  %890 = vtanh.f32 %v128_v46  ;;  %v319_v9 = vsub.f32 %v1081_v55, %v318_v0  ;;  %v243_v46 = vsub.f32 %v241_v28, %v242_v37 }
  0x8c   :  { %v1069_v50 = vand.u32 4294901760, %v889_v48  ;;  %v302_v51 = vand.u32 4294901760, %v301_v47  ;;  %v249_v47 = vsub.f32 %v195_v30, %v1132_v38 }
  0x8d   :  { %v320_v20 = vand.u32 4294901760, %v319_v9 }
  0x8e   :  { %221 = vmatpush.msra.mxu0 %v1069_v50  ;;  %303 = vmatpush.msra.mxu1 %v302_v51  ;;  %v1073_v52 = vsub.f32 %v889_v48, %v1069_v50 }
  0x8f   :  { %447 = vmatpush.msra.mxu3 %v1069_v50 }
  0x90   :  { %v102_v56 = vpop.permute.xlu1 %101  ;;  %v45_v57 = vpop.permute.xlu0 %44  ;;  %383 = vmatpush.msra.mxu2 %v1073_v52  ;;  %v306_v58 = vand.u32 4294901760, %v1073_v52 }
  0x91   :  { %v891_v59 = vpop.eup %890  ;;  %v126_v60 = vadd.f32 %v102_v56, %v77_v54  ;;  %v76_v8 = vmul.f32 %v1049_v26, %v45_v57  ;;  %v244_v56 = vand.u32 4294901760, %v243_v46  ;;  %v250_v57 = vand.u32 4294901760, %v249_v47 }
  0x92   :  { %v1086_v62 = vand.u32 4294901760, %v891_v59  ;;  %v307_v63 = vsub.f32 %v1073_v52, %v306_v58 }
  0x93   :  { %892 = vtanh.f32 %v126_v60  ;;  %v251_v52 = vsub.f32 %v249_v47, %v250_v57 }
  0x94   :  { %223 = vmatpush.msra.mxu0 %v1086_v62  ;;  %449 = vmatpush.msra.mxu3 %v1086_v62  ;;  %v308_v1 = vand.u32 4294901760, %v307_v63  ;;  %v1095_v2 = vsub.f32 %v891_v59, %v1086_v62  ;;  %v1145_v59 = vand.u32 4294901760, %v198_v53 }
  0x95   :  { %v252_v61 = vand.u32 4294901760, %v251_v52 }
  0x96   :  { %225 = vmatpush.msra.mxu0 %v1067_v49  ;;  %309 = vmatpush.msra.mxu1 %v308_v1  ;;  %v312_v5 = vand.u32 4294901760, %v1095_v2 }
  0x97   :  { %386 = vmatpush.msra.mxu2 %v1095_v2  ;;  %451 = vmatpush.msra.mxu3 %v1067_v49 }
  0x98   :  { %v92_v10 = vpop.permute.xlu1 %91  ;;  %v97_v11 = vpop.permute.xlu0 %96  ;;  %v313_v12 = vsub.f32 %v1095_v2, %v312_v5 }
  0x99   :  { %v893_v14 = vpop.eup %892  ;;  %v124_v15 = vadd.f32 %v92_v10, %v75_v7  ;;  %v125_v16 = vadd.f32 %v97_v11, %v76_v8  ;;  %389 = vmatpush.msra.mxu2 %v1081_v55 }
  0x9a   :  { %v1117_v18 = vand.u32 4294901760, %v893_v14  ;;  %v314_v19 = vand.u32 4294901760, %v313_v12 }
  0x9b   :  { %894 = vtanh.f32 %v124_v15 }
  0x9c   :  { %896 = vtanh.f32 %v125_v16  ;;  %227 = vmatpush.msra.mxu0 %v1117_v18  ;;  %315 = vmatpush.msra.mxu1 %v314_v19  ;;  %v323_v21 = vsub.f32 %v893_v14, %v1117_v18 }
  0x9d   :  { %453 = vmatpush.msra.mxu3 %v1117_v18 }
  0x9e   :  { %321 = vmatpush.msra.mxu1 %v320_v20  ;;  %392 = vmatpush.msra.mxu2 %v323_v21  ;;  %v324_v24 = vand.u32 4294901760, %v323_v21 }
  0xa0   :  { %v325_v26 = vsub.f32 %v323_v21, %v324_v24  ;;  %v180_v25 = vpop.permute.xlu0 %179 }
  0xa1   :  { %v895_v29 = vpop.eup %894 }
  0xa2   :  { %v897_v31 = vpop.eup %896  ;;  %v326_v32 = vand.u32 4294901760, %v325_v26  ;;  %v1129_v33 = vand.u32 4294901760, %v895_v29 }
  0xa3   :  { %v228_v34 = vand.u32 4294901760, %v897_v31 }
  0xa4   :  { %327 = vmatpush.msra.mxu1 %v326_v32  ;;  %v335_v36 = vsub.f32 %v895_v29, %v1129_v33 }
  0xa5   :  { %229 = vmatpush.msra.mxu0 %v228_v34  ;;  %455 = vmatpush.msra.mxu3 %v228_v34  ;;  %v329_v41 = vsub.f32 %v897_v31, %v228_v34 }
  0xa6   :  { %v336_v42 = vand.u32 4294901760, %v335_v36 }
  0xa7   :  { %231 = vmatpush.msra.mxu0 %v1129_v33  ;;  %395 = vmatpush.msra.mxu2 %v329_v41  ;;  %v330_v44 = vand.u32 4294901760, %v329_v41 }
  0xa8   :  { %457 = vmatpush.msra.mxu3 %v1129_v33  ;;  %237 = vmatmul.f32.vlgmr.msra.gmra.mxu0 %v236_v35  ;;  %v337_v51 = vsub.f32 %v335_v36, %v336_v42  ;;  %v165_v31 = vpop.permute.xlu0 %164 }
  0xa9   :  { %513 = vmatpush.msrb.mxu0 %v300_v45  ;;  %398 = vmatpush.msra.mxu2 %v335_v36  ;;  %v331_v48 = vsub.f32 %v329_v41, %v330_v44  ;;  %v142_v45 = vld [vmem:[%s1255_s3 + $0x20] sm:$0xff] }
  0xaa   :  { %401 = vmatmul.f32.vlgmr.msra.gmra.mxu2 %v233_v13  ;;  %461 = vmatmul.f32.vlgmr.msra.gmra.mxu3 %v234_v22  ;;  %v338_v40 = vand.u32 4294901760, %v337_v51  ;;  %v201_v60 = vsel %vm187_vm0, %v142_v45, 0 }
  0xab   :  { %517 = vmatpush.msrb.mxu0 %v306_v58  ;;  %v332_v54 = vand.u32 4294901760, %v331_v48  ;;  %v257_v58 = vsub.f32 %v198_v53, %v1145_v59  ;;  %v264_v63 = vand.u32 4294901760, %v201_v60 }
  0xad   :  { %521 = vmatpush.msrb.mxu0 %v312_v5  ;;  %333 = vmatpush.msra.mxu1 %v332_v54  ;;  %v258_v55 = vand.u32 4294901760, %v257_v58  ;;  %v265_v1 = vsub.f32 %v201_v60, %v264_v63 }
  0xaf   :  { %525 = vmatpush.msrb.mxu0 %v318_v0  ;;  %339 = vmatpush.msra.mxu1 %v338_v40  ;;  %v143_v0 = vld [vmem:[%s1255_s3 + $0x28] sm:$0xff] }
  0xb0   :  { %245 = vmatmul.f32.gmra.mxu0 %v244_v56  ;;  %341 = vmatmul.f32.vlgmr.msra.gmra.mxu1 %v1097_v3 }
  0xb1   :  { %529 = vmatpush.msrb.mxu0 %v324_v24  ;;  %577 = vmatpush.msrb.mxu1 %v1054_v39  ;;  %v259_v39 = vsub.f32 %v257_v58, %v258_v55 }
  0xb2   :  { %406 = vmatmul.f32.gmra.mxu2 %v241_v28  ;;  %467 = vmatmul.f32.gmra.mxu3 %v242_v37 }
  0xb3   :  { %533 = vmatpush.msrb.mxu0 %v330_v44  ;;  %579 = vmatpush.msrb.mxu1 %v1069_v50  ;;  %v204_v50 = vsel %vm187_vm0, %v143_v0, 0  ;;  %v260_v2 = vand.u32 4294901760, %v259_v39 }
  0xb4   :  { %v272_v4 = vand.u32 4294901760, %v204_v50 }
  0xb5   :  { %537 = vmatpush.msrb.mxu0 %v336_v42  ;;  %581 = vmatpush.msrb.mxu1 %v1086_v62  ;;  %v266_v62 = vand.u32 4294901760, %v265_v1 }
  0xb6   :  { %v273_v6 = vsub.f32 %v204_v50, %v272_v4 }
  0xb7   :  { %583 = vmatpush.msrb.mxu1 %v1067_v49  ;;  %v144_v49 = vld [vmem:[%s1255_s3 + $0x30] sm:$0xff]  ;;  %v267_v5 = vsub.f32 %v265_v1, %v266_v62 }
  0xb8   :  { %253 = vmatmul.f32.gmra.mxu0 %v252_v61  ;;  %345 = vmatmul.f32.gmra.mxu1 %v1121_v23  ;;  %v207_v7 = vsel %vm187_vm0, %v144_v49, 0  ;;  %v274_v9 = vand.u32 4294901760, %v273_v6 }
  0xb9   :  { %585 = vmatpush.msrb.mxu1 %v1117_v18  ;;  %v268_v8 = vand.u32 4294901760, %v267_v5  ;;  %v280_v10 = vand.u32 4294901760, %v207_v7  ;;  %v170_v18 = vpop.permute.xlu2 %169 }
  0xba   :  { %411 = vmatmul.f32.gmra.mxu2 %v249_v47  ;;  %473 = vmatmul.f32.gmra.mxu3 %v250_v57  ;;  %v275_v11 = vsub.f32 %v273_v6, %v274_v9 }
  0xbb   :  { %587 = vmatpush.msrb.mxu1 %v228_v34  ;;  %v281_v12 = vsub.f32 %v207_v7, %v280_v10 }
  0xbc   :  { %v276_v13 = vand.u32 4294901760, %v275_v11 }
  0xbd   :  { %589 = vmatpush.msrb.mxu1 %v1129_v33  ;;  %v282_v14 = vand.u32 4294901760, %v281_v12 }
  0xbf   :  { %v283_v15 = vsub.f32 %v281_v12, %v282_v14 }
  0xc0   :  { %261 = vmatmul.f32.gmra.mxu0 %v260_v2  ;;  %349 = vmatmul.f32.gmra.mxu1 %v1132_v38 }
  0xc1   :  { %v284_v16 = vand.u32 4294901760, %v283_v15  ;;  %v155_v20 = vpop.permute.xlu2 %154 }
  0xc2   :  { %416 = vmatmul.f32.gmra.mxu2 %v257_v58  ;;  %479 = vmatmul.f32.gmra.mxu3 %v258_v55 }
  0xc8   :  { %269 = vmatmul.f32.gmra.mxu0 %v268_v8  ;;  %353 = vmatmul.f32.gmra.mxu1 %v1145_v59 }
  0xca   :  { %421 = vmatmul.f32.gmra.mxu2 %v265_v1  ;;  %485 = vmatmul.f32.gmra.mxu3 %v266_v62 }
  0xd0   :  { %277 = vmatmul.f32.gmra.mxu0 %v276_v13  ;;  %357 = vmatmul.f32.gmra.mxu1 %v264_v63 }
  0xd2   :  { %426 = vmatmul.f32.gmra.mxu2 %v273_v6  ;;  %491 = vmatmul.f32.gmra.mxu3 %v274_v9 }
  0xd8   :  { %285 = vmatmul.f32.gmra.mxu0 %v284_v16  ;;  %361 = vmatmul.f32.gmra.mxu1 %v272_v4 }
  0xda   :  { %431 = vmatmul.f32.gmra.mxu2 %v281_v12  ;;  %497 = vmatmul.f32.gmra.mxu3 %v282_v14 }
  0xe0   :  { %365 = vmatmul.f32.gmra.mxu1 %v280_v10  ;;  %539 = vmatmul.f32.vlgmr.msrb.gmra.mxu0 %v1097_v3 }
  0xe8   :  { %543 = vmatmul.f32.gmra.mxu0 %v1121_v23  ;;  %591 = vmatmul.f32.vlgmr.msrb.gmra.mxu1 %v1097_v3  ;;  %v175_v3 = vpop.permute.xlu1 %174 }
  0xf0   :  { %547 = vmatmul.f32.gmra.mxu0 %v1132_v38  ;;  %595 = vmatmul.f32.gmra.mxu1 %v1121_v23  ;;  %v160_v26 = vpop.permute.xlu1 %159 }
  0xf8   :  { %551 = vmatmul.f32.gmra.mxu0 %v1145_v59  ;;  %599 = vmatmul.f32.gmra.mxu1 %v1132_v38 }
 0x100   :  { %555 = vmatmul.f32.gmra.mxu0 %v264_v63  ;;  %603 = vmatmul.f32.gmra.mxu1 %v1145_v59 }
 0x108   :  { %559 = vmatmul.f32.gmra.mxu0 %v272_v4  ;;  %607 = vmatmul.f32.gmra.mxu1 %v264_v63 }
 0x110   :  { %563 = vmatmul.f32.gmra.mxu0 %v280_v10  ;;  %611 = vmatmul.f32.gmra.mxu1 %v272_v4 }
 0x118   :  { %615 = vmatmul.f32.gmra.mxu1 %v280_v10 }
 0x125   :  { %v238_v19 = vpop.f32.mrf.mxu0 }
 0x126   :  { %v239_v21 = vadd.f32 %v238_v19, %v155_v20 }
 0x12d   :  { %v246_v22 = vpop.f32.mrf.mxu0  ;;  %v342_v23 = vpop.f32.mrf.mxu1 }
 0x12e   :  { %v343_v24 = vadd.f32 %v342_v23, %v239_v21  ;;  %v247_v27 = vadd.f32 %v246_v22, %v160_v26  ;;  %v402_v46 = vpop.f32.mrf.mxu2  ;;  %v462_v48 = vpop.f32.mrf.mxu3 }
 0x130   :  { %v403_v22 = vadd.f32 %v402_v46, %v343_v24 }
 0x135   :  { %v254_v28 = vpop.f32.mrf.mxu0  ;;  %v346_v29 = vpop.f32.mrf.mxu1 }
 0x136   :  { %v347_v30 = vadd.f32 %v346_v29, %v247_v27  ;;  %v255_v32 = vadd.f32 %v254_v28, %v165_v31  ;;  %v407_v54 = vpop.f32.mrf.mxu2  ;;  %v468_v56 = vpop.f32.mrf.mxu3 }
 0x13d   :  { %v262_v33 = vpop.f32.mrf.mxu0  ;;  %v350_v34 = vpop.f32.mrf.mxu1 }
 0x13e   :  { %v351_v35 = vadd.f32 %v350_v34, %v255_v32  ;;  %v263_v36 = vadd.f32 %v262_v33, %v170_v18  ;;  %v412_v40 = vpop.f32.mrf.mxu2  ;;  %v474_v58 = vpop.f32.mrf.mxu3  ;;  %v408_v18 = vadd.f32 %v407_v54, %v347_v30 }
 0x140   :  { %v413_v13 = vadd.f32 %v412_v40, %v351_v35  ;;  %v469_v31 = vadd.f32 %v468_v56, %v408_v18 }
 0x142   :  { %v475_v23 = vadd.f32 %v474_v58, %v413_v13 }
 0x145   :  { %v270_v37 = vpop.f32.mrf.mxu0  ;;  %v354_v38 = vpop.f32.mrf.mxu1 }
 0x146   :  { %v355_v41 = vadd.f32 %v354_v38, %v263_v36  ;;  %v271_v42 = vadd.f32 %v270_v37, %v175_v3  ;;  %v417_v60 = vpop.f32.mrf.mxu2  ;;  %v480_v63 = vpop.f32.mrf.mxu3  ;;  %v463_v36 = vadd.f32 %v462_v48, %v403_v22 }
 0x148   :  { %v418_v11 = vadd.f32 %v417_v60, %v355_v41 }
 0x14a   :  { %v481_v3 = vadd.f32 %v480_v63, %v418_v11 }
 0x14d   :  { %v278_v43 = vpop.f32.mrf.mxu0  ;;  %v358_v44 = vpop.f32.mrf.mxu1 }
 0x14e   :  { %v359_v47 = vadd.f32 %v358_v44, %v271_v42  ;;  %v422_v1 = vpop.f32.mrf.mxu2  ;;  %v486_v50 = vpop.f32.mrf.mxu3  ;;  %v279_v4 = vadd.f32 %v278_v43, %v180_v25  ;;  %v626_v42 = vld [vmem:[%s1257_s5] sm:$0x1]  ;;  %s939_s5 = smov [#allocation3]  }
 0x14f   :  { %s867_s1 = sshll.u32 %s939_s5, 4  ;;  %s868_s1 = int_to_ptr.vmem [resolvable:$true] %s867_s1 }
 0x150   :  { %v423_v8 = vadd.f32 %v422_v1, %v359_v47 }
 0x152   :  { %v487_v14 = vadd.f32 %v486_v50, %v423_v8 }
 0x155   :  { %v286_v51 = vpop.f32.mrf.mxu0  ;;  %v362_v53 = vpop.f32.mrf.mxu1 }
 0x156   :  { %v427_v49 = vpop.f32.mrf.mxu2  ;;  %v363_v5 = vadd.f32 %v362_v53, %v279_v4  ;;  %v492_v6 = vpop.f32.mrf.mxu3  ;;  %v287_v12 = vadd.f32 %v286_v51, %v185_v17  ;;  %v635_v51 = vsel %vm187_vm0, %v626_v42, 0 }
 0x157   :  { %v1188_v56 = vand.u32 4294901760, %v635_v51 }
 0x158   :  { %v428_v9 = vadd.f32 %v427_v49, %v363_v5 }
 0x159   :  { %v1198_v60 = vsub.f32 %v635_v51, %v1188_v56 }
 0x15a   :  { %v493_v15 = vadd.f32 %v492_v6, %v428_v9 }
 0x15d   :  { %v366_v57 = vpop.f32.mrf.mxu1  ;;  %v540_v59 = vpop.f32.mrf.mxu0 }
 0x15e   :  { %v367_v16 = vadd.f32 %v366_v57, %v287_v12  ;;  %v432_v19 = vpop.f32.mrf.mxu2  ;;  %v498_v32 = vpop.f32.mrf.mxu3  ;;  %v541_v41 = vadd.f32 %v540_v59, %v463_v36 }
 0x160   :  { %v433_v26 = vadd.f32 %v432_v19, %v367_v16 }
 0x162   :  { %v499_v30 = vadd.f32 %v498_v32, %v433_v26 }
 0x165   :  { %v544_v45 = vpop.f32.mrf.mxu0  ;;  %v592_v52 = vpop.f32.mrf.mxu1 }
 0x166   :  { %v545_v34 = vadd.f32 %v544_v45, %v469_v31  ;;  %v593_v46 = vadd.f32 %v592_v52, %v541_v41 }
 0x16d   :  { %v548_v61 = vpop.f32.mrf.mxu0  ;;  %v596_v55 = vpop.f32.mrf.mxu1 }
 0x16e   :  { %v549_v33 = vadd.f32 %v548_v61, %v475_v23  ;;  %v597_v38 = vadd.f32 %v596_v55, %v545_v34 }
 0x175   :  { %v552_v0 = vpop.f32.mrf.mxu0  ;;  %v600_v39 = vpop.f32.mrf.mxu1 }
 0x176   :  { %v553_v27 = vadd.f32 %v552_v0, %v481_v3  ;;  %v601_v37 = vadd.f32 %v600_v39, %v549_v33  ;;  %v631_v33 = vpop.permute.xlu0 %630 }
 0x177   :  { %v633_v34 = vperm.slane %v631_v33, 0 }
 0x17d   :  { %v556_v2 = vpop.f32.mrf.mxu0  ;;  %v604_v62 = vpop.f32.mrf.mxu1 }
 0x17e   :  { %v557_v20 = vadd.f32 %v556_v2, %v487_v14  ;;  %v605_v17 = vadd.f32 %v604_v62, %v553_v27  ;;  %v662_v62 = vand.u32 4294901760, %v1198_v60 }
 0x180   :  { %v663_v11 = vsub.f32 %v1198_v60, %v662_v62 }
 0x182   :  { %v664_v3 = vand.u32 4294901760, %v663_v11 }
 0x185   :  { %v608_v7 = vpop.f32.mrf.mxu1  ;;  %v560_v10 = vpop.f32.mrf.mxu0 }
 0x186   :  { %v561_v21 = vadd.f32 %v560_v10, %v493_v15  ;;  %v609_v28 = vadd.f32 %v608_v7, %v557_v20 }
 0x18d   :  { %v612_v25 = vpop.f32.mrf.mxu1  ;;  %v564_v35 = vpop.f32.mrf.mxu0 }
 0x18e   :  { %v613_v29 = vadd.f32 %v612_v25, %v561_v21  ;;  %v565_v24 = vadd.f32 %v564_v35, %v499_v30 }
 0x190   :  { %898 = vtanh.f32 %v613_v29 }
 0x191   :  { %900 = vtanh.f32 %v609_v28 }
 0x192   :  { %902 = vtanh.f32 %v605_v17 }
 0x193   :  { %904 = vtanh.f32 %v601_v37 }
 0x194   :  { %906 = vtanh.f32 %v597_v38 }
 0x195   :  { %v616_v43 = vpop.f32.mrf.mxu1 }
 0x196   :  { %v899_v44 = vpop.eup %898  ;;  %v617_v47 = vadd.f32 %v616_v43, %v565_v24 }
 0x197   :  { %v901_v48 = vpop.eup %900  ;;  %v1186_v53 = vand.u32 4294901760, %v899_v44 }
 0x198   :  { %908 = vtanh.f32 %v617_v47  ;;  %v903_v54 = vpop.eup %902  ;;  %v1190_v57 = vand.u32 4294901760, %v901_v48 }
 0x199   :  { %910 = vtanh.f32 %v593_v46  ;;  %v905_v59 = vpop.eup %904  ;;  %v1192_v45 = vand.u32 4294901760, %v903_v54  ;;  %v1195_v52 = vsub.f32 %v899_v44, %v1186_v53 }
 0x19a   :  { %v907_v40 = vpop.eup %906  ;;  %v1202_v55 = vand.u32 4294901760, %v905_v59  ;;  %v1205_v63 = vsub.f32 %v901_v48, %v1190_v57 }
 0x19b   :  { %v1209_v1 = vand.u32 4294901760, %v907_v40  ;;  %v686_v50 = vand.u32 4294901760, %v1195_v52  ;;  %v697_v2 = vsub.f32 %v903_v54, %v1192_v45 }
 0x19c   :  { %v692_v5 = vand.u32 4294901760, %v1205_v63  ;;  %v703_v6 = vsub.f32 %v905_v59, %v1202_v55 }
 0x19d   :  { %v687_v8 = vsub.f32 %v1195_v52, %v686_v50  ;;  %v698_v9 = vand.u32 4294901760, %v697_v2  ;;  %v709_v10 = vsub.f32 %v907_v40, %v1209_v1 }
 0x19e   :  { %v909_v58 = vpop.eup %908  ;;  %v693_v13 = vsub.f32 %v1205_v63, %v692_v5  ;;  %v704_v14 = vand.u32 4294901760, %v703_v6 }
 0x19f   :  { %v1200_v61 = vand.u32 4294901760, %v909_v58  ;;  %v911_v0 = vpop.eup %910  ;;  %v688_v16 = vand.u32 4294901760, %v687_v8  ;;  %v699_v18 = vsub.f32 %v697_v2, %v698_v9  ;;  %v710_v19 = vand.u32 4294901760, %v709_v10 }
 0x1a0   :  { %v1215_v49 = vand.u32 4294901760, %v911_v0  ;;  %v694_v20 = vand.u32 4294901760, %v693_v13  ;;  %v705_v21 = vsub.f32 %v703_v6, %v704_v14 }
 0x1a1   :  { %647 = vmatpush.msrb.mxu2 %v1200_v61  ;;  %v679_v39 = vsub.f32 %v909_v58, %v1200_v61  ;;  %v700_v23 = vand.u32 4294901760, %v699_v18  ;;  %v711_v25 = vsub.f32 %v709_v10, %v710_v19 }
 0x1a2   :  { %v715_v15 = vsub.f32 %v911_v0, %v1215_v49  ;;  %v706_v26 = vand.u32 4294901760, %v705_v21 }
 0x1a3   :  { %649 = vmatpush.msrb.mxu2 %v1186_v53  ;;  %v680_v4 = vand.u32 4294901760, %v679_v39  ;;  %v712_v28 = vand.u32 4294901760, %v711_v25 }
 0x1a4   :  { %v716_v22 = vand.u32 4294901760, %v715_v15 }
 0x1a5   :  { %651 = vmatpush.msrb.mxu2 %v1190_v57  ;;  %v681_v7 = vsub.f32 %v679_v39, %v680_v4 }
 0x1a6   :  { %v717_v27 = vsub.f32 %v715_v15, %v716_v22 }
 0x1a7   :  { %653 = vmatpush.msrb.mxu2 %v1192_v45  ;;  %v682_v12 = vand.u32 4294901760, %v681_v7 }
 0x1a8   :  { %v718_v29 = vand.u32 4294901760, %v717_v27 }
 0x1a9   :  { %655 = vmatpush.msrb.mxu2 %v1202_v55  ;;  %683 = vmatpush.msrb.mxu3 %v682_v12 }
 0x1ab   :  { %657 = vmatpush.msrb.mxu2 %v1209_v1  ;;  %689 = vmatpush.msrb.mxu3 %v688_v16 }
 0x1ad   :  { %659 = vmatpush.msrb.mxu2 %v1215_v49  ;;  %695 = vmatpush.msrb.mxu3 %v694_v20 }
 0x1ae   :  { %665 = vmatmul.f32.vlgmr.msrb.gmra.mxu2 %v664_v3 }
 0x1af   :  { %736 = vmatpush.msra.mxu2 %v679_v39  ;;  %701 = vmatpush.msrb.mxu3 %v700_v23 }
 0x1b1   :  { %739 = vmatpush.msra.mxu2 %v1195_v52  ;;  %707 = vmatpush.msrb.mxu3 %v706_v26 }
 0x1b3   :  { %742 = vmatpush.msra.mxu2 %v1205_v63  ;;  %713 = vmatpush.msrb.mxu3 %v712_v28 }
 0x1b5   :  { %745 = vmatpush.msra.mxu2 %v697_v2  ;;  %719 = vmatpush.msrb.mxu3 %v718_v29 }
 0x1b6   :  { %721 = vmatmul.f32.vlgmr.msrb.gmra.mxu3 %v1188_v56 }
 0x1b7   :  { %748 = vmatpush.msra.mxu2 %v703_v6  ;;  %771 = vmatpush.msra.mxu3 %v1200_v61 }
 0x1b9   :  { %751 = vmatpush.msra.mxu2 %v709_v10  ;;  %773 = vmatpush.msra.mxu3 %v1186_v53 }
 0x1bb   :  { %754 = vmatpush.msra.mxu2 %v715_v15  ;;  %775 = vmatpush.msra.mxu3 %v1190_v57 }
 0x1bc   :  { %757 = vmatmul.f32.vlgmr.msra.gmra.mxu2 %v1198_v60 }
 0x1bd   :  { %803 = vmatpush.msrb.mxu2 %v680_v4  ;;  %777 = vmatpush.msra.mxu3 %v1192_v45 }
 0x1bf   :  { %807 = vmatpush.msrb.mxu2 %v686_v50  ;;  %779 = vmatpush.msra.mxu3 %v1202_v55 }
 0x1c1   :  { %811 = vmatpush.msrb.mxu2 %v692_v5  ;;  %781 = vmatpush.msra.mxu3 %v1209_v1 }
 0x1c3   :  { %815 = vmatpush.msrb.mxu2 %v698_v9  ;;  %783 = vmatpush.msra.mxu3 %v1215_v49 }
 0x1c4   :  { %787 = vmatmul.f32.vlgmr.msra.gmra.mxu3 %v662_v62 }
 0x1c5   :  { %819 = vmatpush.msrb.mxu2 %v704_v14  ;;  %843 = vmatpush.msrb.mxu3 %v1200_v61 }
 0x1c7   :  { %823 = vmatpush.msrb.mxu2 %v710_v19  ;;  %845 = vmatpush.msrb.mxu3 %v1186_v53 }
 0x1c9   :  { %827 = vmatpush.msrb.mxu2 %v716_v22  ;;  %847 = vmatpush.msrb.mxu3 %v1190_v57 }
 0x1ca   :  { %829 = vmatmul.f32.vlgmr.msrb.gmra.mxu2 %v1188_v56 }
 0x1cb   :  { %849 = vmatpush.msrb.mxu3 %v1192_v45 }
 0x1cd   :  { %851 = vmatpush.msrb.mxu3 %v1202_v55 }
 0x1cf   :  { %853 = vmatpush.msrb.mxu3 %v1209_v1 }
 0x1d1   :  { %855 = vmatpush.msrb.mxu3 %v1215_v49 }
 0x1d2   :  { %857 = vmatmul.f32.vlgmr.msrb.gmra.mxu3 %v1188_v56 }
 0x231   :  { %v666_v31 = vpop.f32.mrf.mxu2 }
 0x232   :  { %v667_v35 = vadd.f32 %v666_v31, %v633_v34 }
 0x239   :  { %v722_v32 = vpop.f32.mrf.mxu3 }
 0x23a   :  { %v723_v30 = vadd.f32 %v722_v32, %v667_v35 }
 0x23f   :  { %v758_v17 = vpop.f32.mrf.mxu2 }
 0x240   :  { %v759_v37 = vadd.f32 %v758_v17, %v723_v30 }
 0x247   :  { %v788_v36 = vpop.f32.mrf.mxu3 }
 0x248   :  { %v789_v41 = vadd.f32 %v788_v36, %v759_v37 }
 0x24d   :  { %v830_v38 = vpop.f32.mrf.mxu2 }
 0x24e   :  { %v831_v24 = vadd.f32 %v830_v38, %v789_v41 }
 0x255   :  { %v858_v42 = vpop.f32.mrf.mxu3 }
 0x256   :  { %v859_v43 = vadd.f32 %v858_v42, %v831_v24 }
 0x258   :  { %861 = vst [vmem:[#allocation3] sm:$0x1] %v859_v43 }
 0x259   :  { %872 = dma.vmem_to_hbm [thread:$0]  %s868_s1, 16, %s870_s11, [#allocation4]  }
 0x25a   :  { %936 = dma.done.wait [#allocation4], 16  }
 0x25b   :  { %937 = vsyncadd [#allocation4], 4294967280 }
 0x25c   :  { %877 = vsyncpa [#allocation4], 1 }

</bundles_post_ra>
